<compile_context>
chip_gen: v5e
topology: v5e:2x2
jax: 0.10.0
libtpu: 0.0.40
codegen_flags: <defaults>
</compile_context>

<pallas_src>
import functools

import jax
import jax.numpy as jnp
from jax.experimental import pallas as pl
from jax.experimental.pallas import tpu as pltpu

LANE = 128  # lane-dense padding target for channel / contraction dims


def _ceil_to(n, m=LANE):
    return ((n + m - 1) // m) * m


def _bf16_round(x):
    return x.astype(jnp.bfloat16).astype(jnp.float32)


# ----------------------------------------------------------------------------
# Fused octave-layer kernel (per batch element, both frequency branches):
#   y_lo = Pcat @ Wcat                        one low-res MXU pass, 256 lanes
#          [:, :Cp]  -> y_l  (h2l + l2l + b_l)
#          [:, Cp:]  -> z    (l2h conv at low resolution, no bias)
#   y_h  = P_h @ W_h2h  +  U @ z              conv_h2h + b_h + exact upsample
#   out  = relu(y_* [+ residual])
# Patches / weights are bf16, accumulation is f32; U is 0/1 and applied in f32
# so the upsample is exact (each output row selects exactly one input row).
# ----------------------------------------------------------------------------
def _octave_layer_kernel(*refs, has_residual):
    if has_residual:
        ph, pcat, u, whh, wcat, resh, resl, oh, ol = refs
    else:
        ph, pcat, u, whh, wcat, oh, ol = refs
        resh = resl = None
    f32 = jnp.float32
    cp = whh.shape[-1]                                                # 128

    y_lo = jnp.dot(pcat[0], wcat[...], preferred_element_type=f32)    # (LW, 2cp)
    y_l = y_lo[:, :cp]                                                # low branch
    z = y_lo[:, cp:]                                                  # l2h @ low res
    y_h = jnp.dot(ph[0], whh[...], preferred_element_type=f32)        # (HW, cp)
    y_h = y_h + jnp.dot(u[...], z, preferred_element_type=f32)        # NN upsample

    if has_residual:
        y_h = y_h + resh[0].astype(f32)
        y_l = y_l + resl[0].astype(f32)
    oh[0] = jnp.maximum(y_h, 0.0).astype(oh.dtype)
    ol[0] = jnp.maximum(y_l, 0.0).astype(ol.dtype)


# ----------------------------------------------------------------------------
# Host-side layout prep (pure data movement / packing, no conv math)
# ----------------------------------------------------------------------------
def avg_pool2(x):
    N, H, W, C = x.shape
    return x.astype(jnp.float32).reshape(N, H // 2, 2, W // 2, 2, C).mean(axis=(2, 4))


def upsample2(x):  # reference-path only
    return jnp.repeat(jnp.repeat(x, 2, axis=1), 2, axis=2)


def upsample_matrix(H, W):
    """(H*W, (H//2)*(W//2)) 0/1 selection matrix (f32, exact upsample)."""
    Hl, Wl = H // 2, W // 2
    r = jnp.arange(H * W)
    lo = (r // W // 2) * Wl + (r % W) // 2
    return (lo[:, None] == jnp.arange(Hl * Wl)[None, :]).astype(jnp.float32)


def im2col_3x3(x, kpad, bias_lane=None):
    """x: (N, H, W, C) -> bf16 patch matrix (N, H*W, kpad), kpad >= 9*C.
    If bias_lane is given, that padding column is set to 1.0 (BN-shift lane)."""
    N, H, W, C = x.shape
    xp = jnp.pad(x, ((0, 0), (1, 1), (1, 1), (0, 0)))
    taps = [xp[:, i:i + H, j:j + W, :] for i in range(3) for j in range(3)]
    p = jnp.concatenate(taps, axis=-1).reshape(N, H * W, 9 * C).astype(jnp.bfloat16)
    pad = jnp.zeros((N, H * W, kpad - 9 * C), jnp.bfloat16)
    if bias_lane is not None:
        pad = pad.at[:, :, bias_lane - 9 * C].set(1.0)
    return jnp.concatenate([p, pad], axis=-1)


def _pad_lanes_bf16(x, n=LANE):
    return jnp.pad(x, ((0, 0), (0, 0), (0, n - x.shape[-1]))).astype(jnp.bfloat16)


# ----------------------------------------------------------------------------
# Fused octave layer wrapper (one pallas_call for both branches)
# ----------------------------------------------------------------------------
def octave_layer_fused(x_h, x_l, pp, u_mat, res_h=None, res_l=None,
                       out_dtype=jnp.float32):
    N, H, W, _ = x_h.shape
    Hl, Wl = x_l.shape[1], x_l.shape[2]
    HW, LW = H * W, Hl * Wl
    Kh, Kl, Cp = pp["Kh"], pp["Kl"], LANE
    bias_lane = pp["bias_lane"]

    ph = im2col_3x3(x_h, Kh, bias_lane)                 # (N, HW, Kh)     bf16
    php = im2col_3x3(avg_pool2(x_h), Kh, bias_lane)     # (N, LW, Kh)     bf16
    plo = im2col_3x3(x_l, Kl)                           # (N, LW, Kl)     bf16
    pcat = jnp.concatenate([php, plo], axis=-1)         # (N, LW, Kh+Kl)  bf16

    args = [ph, pcat, u_mat, pp["whh"], pp["wcat"]]
    in_specs = [
        pl.BlockSpec((1, HW, Kh), lambda n: (n, 0, 0)),
        pl.BlockSpec((1, LW, Kh + Kl), lambda n: (n, 0, 0)),
        pl.BlockSpec((HW, LW), lambda n: (0, 0)),
        pl.BlockSpec((Kh, Cp), lambda n: (0, 0)),
        pl.BlockSpec((Kh + Kl, 2 * Cp), lambda n: (0, 0)),
    ]
    has_res = res_h is not None
    if has_res:
        args += [_pad_lanes_bf16(res_h.reshape(N, HW, res_h.shape[-1])),
                 _pad_lanes_bf16(res_l.reshape(N, LW, res_l.shape[-1]))]
        in_specs += [pl.BlockSpec((1, HW, Cp), lambda n: (n, 0, 0)),
                     pl.BlockSpec((1, LW, Cp), lambda n: (n, 0, 0))]

    out_shape = (jax.ShapeDtypeStruct((N, HW, Cp), out_dtype),
                 jax.ShapeDtypeStruct((N, LW, Cp), out_dtype))
    out_specs = (pl.BlockSpec((1, HW, Cp), lambda n: (n, 0, 0)),
                 pl.BlockSpec((1, LW, Cp), lambda n: (n, 0, 0)))

    kern = functools.partial(_octave_layer_kernel, has_residual=has_res)
    return pl.pallas_call(
        kern,
        out_shape=out_shape,
        grid=(N,),
        in_specs=in_specs,
        out_specs=out_specs,
        compiler_params=pltpu.CompilerParams(
            dimension_semantics=("parallel",)),
    )(*args)


# ----------------------------------------------------------------------------
# Bottleneck forward: ocb1 (OctaveCBR) -> ocb2 (OctaveCB) -> +residual -> ReLU.
# Residual add + final ReLU are fused into the second layer's kernel epilogue;
# layer-1 activations stay bf16 end-to-end (kernel writes bf16 directly).
# ----------------------------------------------------------------------------
def bottleneck_forward(x_h, x_l, packed):
    N, H, W, _ = x_h.shape
    Hl, Wl = x_l.shape[1], x_l.shape[2]
    u_mat = upsample_matrix(H, W)
    p1, p2 = packed["ocb1"], packed["ocb2"]

    y1h, y1l = octave_layer_fused(x_h, x_l, p1, u_mat,
                                  out_dtype=jnp.bfloat16)             # CBR
    a_h = y1h[:, :, :p1["cout_h"]].reshape(N, H, W, p1["cout_h"])
    a_l = y1l[:, :, :p1["cout_l"]].reshape(N, Hl, Wl, p1["cout_l"])

    y2h, y2l = octave_layer_fused(a_h, a_l, p2, u_mat,
                                  res_h=x_h, res_l=x_l,
                                  out_dtype=jnp.float32)              # CB + res + ReLU
    out_h = y2h[:, :, :p2["cout_h"]].reshape(N, H, W, p2["cout_h"])
    out_l = y2l[:, :, :p2["cout_l"]].reshape(N, Hl, Wl, p2["cout_l"])
    return out_h, out_l


# ----------------------------------------------------------------------------
# Parameter construction & packing (inference-mode BN folded, bf16 weights)
# ----------------------------------------------------------------------------
def make_octave_params(key, cin, cout, alpha):
    cl_in = int(alpha * cin)
    ch_in = cin - cl_in
    cl_out = int(alpha * cout)
    ch_out = cout - cl_out
    k = jax.random.split(key, 6)

    def w(kk, ci, co):
        return jax.random.normal(kk, (3, 3, ci, co), jnp.float32) * 0.1

    eps = 1e-5

    def bn(kk, c):  # non-trivial inference-mode running stats (exercises the fold)
        kg, kb, km, kv = jax.random.split(kk, 4)
        gamma = 1.0 + 0.1 * jax.random.normal(kg, (c,), jnp.float32)
        beta = 0.1 * jax.random.normal(kb, (c,), jnp.float32)
        mean = 0.1 * jax.random.normal(km, (c,), jnp.float32)
        var = 1.0 + 0.1 * jax.random.uniform(kv, (c,), jnp.float32)
        scale = gamma / jnp.sqrt(var + eps)
        shift = beta - mean * scale
        return scale, shift

    sh, bh = bn(k[4], ch_out)
    sl, bl = bn(k[5], cl_out)
    return dict(
        w_h2h=w(k[0], ch_in, ch_out), w_l2h=w(k[1], cl_in, ch_out),
        w_h2l=w(k[2], ch_in, cl_out), w_l2l=w(k[3], cl_in, cl_out),
        bn_h_scale=sh, bn_h_shift=bh, bn_l_scale=sl, bn_l_shift=bl,
    )


def prepare_octave_layer(p):
    """Fold BN scale into bf16 conv weights, fold BN shift into a bias row at a
    dedicated 1.0 patch lane, and pack into the two matmul weight slabs."""
    w_h2h = (p["w_h2h"] * p["bn_h_scale"]).astype(jnp.bfloat16)
    w_l2h = (p["w_l2h"] * p["bn_h_scale"]).astype(jnp.bfloat16)
    w_h2l = (p["w_h2l"] * p["bn_l_scale"]).astype(jnp.bfloat16)
    w_l2l = (p["w_l2l"] * p["bn_l_scale"]).astype(jnp.bfloat16)
    bh = _bf16_round(p["bn_h_shift"])
    bl = _bf16_round(p["bn_l_shift"])
    ch_in, ch_out = w_h2h.shape[2], w_h2h.shape[3]
    cl_in, cl_out = w_l2l.shape[2], w_l2l.shape[3]
    kh_real, kl_real = 9 * ch_in, 9 * cl_in
    Kh = _ceil_to(kh_real + 1)          # always >= 1 spare pad lane for the bias
    Kl = _ceil_to(kl_real)
    bias_lane = kh_real

    # High-res matmul weight: conv_h2h with b_h in the bias row.
    whh = jnp.zeros((Kh, LANE), jnp.bfloat16)
    whh = whh.at[:kh_real, :ch_out].set(w_h2h.reshape(kh_real, ch_out))
    whh = whh.at[bias_lane, :ch_out].set(bh.astype(jnp.bfloat16))

    # Combined low-res matmul weight (Kh+Kl, 2*LANE):
    #   cols [0:LANE)       <- h2l (Kh rows) + l2l (Kl rows) + b_l (bias row)
    #   cols [LANE:2*LANE)  <- l2h (Kl rows), no bias (b_h added in whh pass)
    wcat = jnp.zeros((Kh + Kl, 2 * LANE), jnp.bfloat16)
    wcat = wcat.at[:kh_real, :cl_out].set(w_h2l.reshape(kh_real, cl_out))
    wcat = wcat.at[bias_lane, :cl_out].set(bl.astype(jnp.bfloat16))
    wcat = wcat.at[Kh:Kh + kl_real, :cl_out].set(w_l2l.reshape(kl_real, cl_out))
    wcat = wcat.at[Kh:Kh + kl_real, LANE:LANE + ch_out].set(
        w_l2h.reshape(kl_real, ch_out))

    return dict(
        whh=whh, wcat=wcat, Kh=Kh, Kl=Kl, bias_lane=bias_lane,
        cout_h=ch_out, cout_l=cl_out,
        ref=dict(
            w_h2h=w_h2h.astype(jnp.float32), w_l2h=w_l2h.astype(jnp.float32),
            w_h2l=w_h2l.astype(jnp.float32), w_l2l=w_l2l.astype(jnp.float32),
            bh=bh, bl=bl),
    )


# ----------------------------------------------------------------------------
# Pure-JAX reference (lax.conv) using the same BN-folded bf16 weights
# ----------------------------------------------------------------------------
def conv3x3_ref(x, w):
    return jax.lax.conv_general_dilated(
        x, w, window_strides=(1, 1), padding=((1, 1), (1, 1)),
        dimension_numbers=("NHWC", "HWIO", "NHWC"))


def octave_cb_ref(x_h, x_l, r, res_h=None, res_l=None):
    y_h = (conv3x3_ref(x_h, r["w_h2h"])
           + upsample2(conv3x3_ref(x_l, r["w_l2h"])) + r["bh"])
    y_l = (conv3x3_ref(_bf16_round(avg_pool2(x_h)), r["w_h2l"])
           + conv3x3_ref(x_l, r["w_l2l"]) + r["bl"])
    if res_h is not None:
        y_h = y_h + res_h
        y_l = y_l + res_l
    return jnp.maximum(y_h, 0.0), jnp.maximum(y_l, 0.0)


def bottleneck_ref(x_h, x_l, packed):
    r1, r2 = packed["ocb1"]["ref"], packed["ocb2"]["ref"]
    h1, l1 = octave_cb_ref(x_h, x_l, r1)
    h1, l1 = _bf16_round(h1), _bf16_round(l1)   # mirror kernel bf16 activations
    return octave_cb_ref(h1, l1, r2, x_h, x_l)


# ----------------------------------------------------------------------------
if __name__ == "__main__":
    key = jax.random.PRNGKey(0)

    # Bottleneck(inplanes=8, planes=8, alpha=0.5, stride=1, First=False)
    inplanes, planes, alpha = 8, 8, 0.5
    width = int(planes * (64 / 64.0)) * 1          # = planes
    N, H, W = 2, 16, 16

    cl_in = int(alpha * inplanes)
    ch_in = inplanes - cl_in

    k_xh, k_xl, k_p1, k_p2 = jax.random.split(key, 4)
    # inputs are bf16-representable so the kernel's bf16 cast is lossless
    x_h = _bf16_round(jax.random.normal(k_xh, (N, H, W, ch_in), jnp.float32))
    x_l = _bf16_round(jax.random.normal(k_xl, (N, H // 2, W // 2, cl_in), jnp.float32))

    raw = dict(ocb1=make_octave_params(k_p1, inplanes, width, alpha),
               ocb2=make_octave_params(k_p2, width, planes * 1, alpha))  # expansion=1
    packed = dict(ocb1=prepare_octave_layer(raw["ocb1"]),
                  ocb2=prepare_octave_layer(raw["ocb2"]))

    out_h, out_l = bottleneck_forward(x_h, x_l, packed)
    out_h = jax.block_until_ready(out_h)
    out_l = jax.block_until_ready(out_l)

    ref_h, ref_l = bottleneck_ref(x_h, x_l, packed)
    assert jnp.allclose(out_h, ref_h, rtol=1e-2, atol=1e-2), "high-freq mismatch"
    assert jnp.allclose(out_l, ref_l, rtol=1e-2, atol=1e-2), "low-freq mismatch"

    print("KERNEL_OK")
</pallas_src>

<mosaic_0001>
module attributes {stable_mosaic.version = 11 : i64} {
  func.func @_octave_layer_kernel(%arg0: i32, %arg1: memref<1x256x128xbf16, #tpu.memory_space<vmem>>, %arg2: memref<1x64x256xbf16, #tpu.memory_space<vmem>>, %arg3: memref<256x64xf32, #tpu.memory_space<vmem>>, %arg4: memref<128x128xbf16, #tpu.memory_space<vmem>>, %arg5: memref<256x256xbf16, #tpu.memory_space<vmem>>, %arg6: memref<1x256x128xbf16, #tpu.memory_space<vmem>>, %arg7: memref<1x64x128xbf16, #tpu.memory_space<vmem>>) attributes {dimension_semantics = [#tpu.dimension_semantics<parallel>], iteration_bounds = array<i64: 2>, scalar_prefetch = 0 : i64, scratch_operands = 0 : i64, tpu.core_type = #tpu.core_type<tc>, window_params = [{transform_indices = @transform_0, window_bounds = array<i64: 1, 256, 128>}, {transform_indices = @transform_1, window_bounds = array<i64: 1, 64, 256>}, {pipeline_mode = #tpu.pipeline_mode<synchronous>, transform_indices = @transform_2, window_bounds = array<i64: 256, 64>}, {pipeline_mode = #tpu.pipeline_mode<synchronous>, transform_indices = @transform_3, window_bounds = array<i64: 128, 128>}, {pipeline_mode = #tpu.pipeline_mode<synchronous>, transform_indices = @transform_4, window_bounds = array<i64: 256, 256>}, {transform_indices = @transform_5, window_bounds = array<i64: 1, 256, 128>}, {transform_indices = @transform_6, window_bounds = array<i64: 1, 64, 128>}]} {
    %c0 = arith.constant 0 : index
    %c0_0 = arith.constant 0 : index
    %c0_1 = arith.constant 0 : index
    %0 = vector.load %arg2[%c0, %c0_0, %c0_1] : memref<1x64x256xbf16, #tpu.memory_space<vmem>>, vector<1x64x256xbf16>
    %1 = vector.shape_cast %0 : vector<1x64x256xbf16> to vector<64x256xbf16>
    %c0_2 = arith.constant 0 : index
    %c0_3 = arith.constant 0 : index
    %2 = vector.load %arg5[%c0_2, %c0_3] : memref<256x256xbf16, #tpu.memory_space<vmem>>, vector<256x256xbf16>
    %cst = arith.constant dense<0.000000e+00> : vector<64x256xf32>
    %3 = tpu.matmul %1, %2, %cst {dimension_numbers = #tpu.dot_dimension_numbers<[1], [0], [0], [1], [0, 0, 1, 1], [], []>} : vector<64x256xbf16>, vector<256x256xbf16>, vector<64x256xf32> -> vector<64x256xf32>
    %4 = vector.extract_strided_slice %3 {offsets = [0, 0], sizes = [64, 128], strides = [1, 1]} : vector<64x256xf32> to vector<64x128xf32>
    %5 = vector.extract_strided_slice %3 {offsets = [0, 128], sizes = [64, 128], strides = [1, 1]} : vector<64x256xf32> to vector<64x128xf32>
    %c0_4 = arith.constant 0 : index
    %c0_5 = arith.constant 0 : index
    %c0_6 = arith.constant 0 : index
    %6 = vector.load %arg1[%c0_4, %c0_5, %c0_6] : memref<1x256x128xbf16, #tpu.memory_space<vmem>>, vector<1x256x128xbf16>
    %7 = vector.shape_cast %6 : vector<1x256x128xbf16> to vector<256x128xbf16>
    %c0_7 = arith.constant 0 : index
    %c0_8 = arith.constant 0 : index
    %8 = vector.load %arg4[%c0_7, %c0_8] : memref<128x128xbf16, #tpu.memory_space<vmem>>, vector<128x128xbf16>
    %cst_9 = arith.constant dense<0.000000e+00> : vector<256x128xf32>
    %9 = tpu.matmul %7, %8, %cst_9 {dimension_numbers = #tpu.dot_dimension_numbers<[1], [0], [0], [1], [0, 0, 1, 1], [], []>} : vector<256x128xbf16>, vector<128x128xbf16>, vector<256x128xf32> -> vector<256x128xf32>
    %c0_10 = arith.constant 0 : index
    %c0_11 = arith.constant 0 : index
    %10 = vector.load %arg3[%c0_10, %c0_11] : memref<256x64xf32, #tpu.memory_space<vmem>>, vector<256x64xf32>
    %cst_12 = arith.constant dense<0.000000e+00> : vector<256x128xf32>
    %11 = tpu.matmul %10, %5, %cst_12 {dimension_numbers = #tpu.dot_dimension_numbers<[1], [0], [0], [1], [0, 0, 1, 1], [], []>} : vector<256x64xf32>, vector<64x128xf32>, vector<256x128xf32> -> vector<256x128xf32>
    %12 = arith.addf %9, %11 : vector<256x128xf32>
    %cst_13 = arith.constant 0.000000e+00 : f32
    %13 = vector.broadcast %cst_13 : f32 to vector<256x128xf32>
    %14 = arith.maximumf %12, %13 : vector<256x128xf32>
    %15 = arith.truncf %14 : vector<256x128xf32> to vector<256x128xbf16>
    %c0_14 = arith.constant 0 : index
    %c0_15 = arith.constant 0 : index
    %c0_16 = arith.constant 0 : index
    %16 = vector.load %arg6[%c0_14, %c0_15, %c0_16] : memref<1x256x128xbf16, #tpu.memory_space<vmem>>, vector<1x256x128xbf16>
    %17 = vector.shape_cast %16 : vector<1x256x128xbf16> to vector<256x128xbf16>
    %18 = vector.shape_cast %15 : vector<256x128xbf16> to vector<1x256x128xbf16>
    tpu.vector_store %arg6[%c0_14, %c0_15, %c0_16], %18 {strides = array<i32>} : memref<1x256x128xbf16, #tpu.memory_space<vmem>>, vector<1x256x128xbf16>,
    %cst_17 = arith.constant 0.000000e+00 : f32
    %19 = vector.broadcast %cst_17 : f32 to vector<64x128xf32>
    %20 = arith.maximumf %4, %19 : vector<64x128xf32>
    %21 = arith.truncf %20 : vector<64x128xf32> to vector<64x128xbf16>
    %c0_18 = arith.constant 0 : index
    %c0_19 = arith.constant 0 : index
    %c0_20 = arith.constant 0 : index
    %22 = vector.load %arg7[%c0_18, %c0_19, %c0_20] : memref<1x64x128xbf16, #tpu.memory_space<vmem>>, vector<1x64x128xbf16>
    %23 = vector.shape_cast %22 : vector<1x64x128xbf16> to vector<64x128xbf16>
    %24 = vector.shape_cast %21 : vector<64x128xbf16> to vector<1x64x128xbf16>
    tpu.vector_store %arg7[%c0_18, %c0_19, %c0_20], %24 {strides = array<i32>} : memref<1x64x128xbf16, #tpu.memory_space<vmem>>, vector<1x64x128xbf16>,
    return
  }
  func.func @transform_0(%arg0: i32) -> (i32, i32, i32) {
    %c0_i32 = arith.constant 0 : i32
    %c0_i32_0 = arith.constant 0 : i32
    %c0_i32_1 = arith.constant 0 : i32
    return %arg0, %c0_i32, %c0_i32_0 : i32, i32, i32
  }
  func.func @transform_1(%arg0: i32) -> (i32, i32, i32) {
    %c0_i32 = arith.constant 0 : i32
    %c0_i32_0 = arith.constant 0 : i32
    %c0_i32_1 = arith.constant 0 : i32
    return %arg0, %c0_i32, %c0_i32_0 : i32, i32, i32
  }
  func.func @transform_2(%arg0: i32) -> (i32, i32) {
    %c0_i32 = arith.constant 0 : i32
    %c0_i32_0 = arith.constant 0 : i32
    %c0_i32_1 = arith.constant 0 : i32
    return %c0_i32, %c0_i32_0 : i32, i32
  }
  func.func @transform_3(%arg0: i32) -> (i32, i32) {
    %c0_i32 = arith.constant 0 : i32
    %c0_i32_0 = arith.constant 0 : i32
    %c0_i32_1 = arith.constant 0 : i32
    return %c0_i32, %c0_i32_0 : i32, i32
  }
  func.func @transform_4(%arg0: i32) -> (i32, i32) {
    %c0_i32 = arith.constant 0 : i32
    %c0_i32_0 = arith.constant 0 : i32
    %c0_i32_1 = arith.constant 0 : i32
    return %c0_i32, %c0_i32_0 : i32, i32
  }
  func.func @transform_5(%arg0: i32) -> (i32, i32, i32) {
    %c0_i32 = arith.constant 0 : i32
    %c0_i32_0 = arith.constant 0 : i32
    %c0_i32_1 = arith.constant 0 : i32
    return %arg0, %c0_i32, %c0_i32_0 : i32, i32, i32
  }
  func.func @transform_6(%arg0: i32) -> (i32, i32, i32) {
    %c0_i32 = arith.constant 0 : i32
    %c0_i32_0 = arith.constant 0 : i32
    %c0_i32_1 = arith.constant 0 : i32
    return %arg0, %c0_i32, %c0_i32_0 : i32, i32, i32
  }
}

</mosaic_0001>

<bundles_post_ra>
// kernel: tpu_custom_call.1
= control target key start
LH: loop header
LB: loop body
LE: loop exit
PB: predicated region body
PF: predicated region fallthrough
CT: control target
= control target key end

     0   :  { %12 = vsyncpa [#allocation3], 0  ;;  %s2646_s0 = inlined_call_operand.vmem [shape: bf16[2,256,128], index: 0, kind: input, shape index: {}]   ;;  %s2647_s1 = inlined_call_operand.vmem [shape: bf16[2,64,256], index: 1, kind: input, shape index: {}]   ;;  %s2648_s2 = inlined_call_operand.vmem [shape: f32[256,64], index: 2, kind: input, shape index: {}]   ;;  %s2649_s3 = inlined_call_operand.hbm [shape: bf16[128,128], index: 3, kind: input, shape index: {}]   ;;  %s2650_s4 = inlined_call_operand.hbm [shape: bf16[256,256], index: 4, kind: input, shape index: {}]   ;;  %s2651_s5 = inlined_call_operand.hbm [shape: bf16[2,256,128], index: 5, kind: output, shape index: {0}]   ;;  %s2652_s6 = inlined_call_operand.hbm [shape: bf16[2,64,128], index: 6, kind: output, shape index: {1}]  }
   0x1   :  { %13 = vsyncpa [#allocation6], 0 }
   0x2   :  { %14 = vsyncpa [#allocation4], 0 }
   0x3   :  { %16 = vsyncpa [#allocation4 + $0x1], 0 }
   0x4   :  { %17 = vsyncpa [#allocation9], 0 }
   0x5   :  { %19 = vsyncpa [#allocation9 + $0x1], 0  ;;  %s2271_s21 = smov 0   ;;  %s2273_s22 = smov 0  }
   0x6   :  { %s2275_s23 = smov 0   ;;  %s2277_s24 = smov 0  }
   0x7 LB: > { %s2292_s25 = sadd.s32 4294967295, %s2226_s24   ;;  %s1481_s26 = sadd.s32 4294967294, %s2226_s24   ;;  %s2226_s24 = sphi %s2277_s24, %s2659_s24   ;;  %s2222_s23 = sphi %s2275_s23, %s2658_s23   ;;  %s2218_s22 = sphi %s2273_s22, %s2657_s22   ;;  %s2214_s21 = sphi %s2271_s21, %s2656_s21  }
   0x8   : > { %s2296_s27 = sadd.s32 1, %s2226_s24   ;;  %s147_s28 = sadd.s32 1, %s2222_s23 }
   0x9   : > { %s144_s29 = ssub.s32 %s2226_s24, %s2296_s27  ;;  %p157_p0 = scmp.ne.s32.totalorder %s2222_s23, %s2218_s22 }
   0xa   : > { %p145_p1 = scmp.eq.s32.totalorder %s144_s29, 0  ;;  %p158_p2 = scmp.eq.s32.totalorder %s2292_s25, 1 }
   0xb   : > { %p163_p3 = scmp.ne.s32.totalorder %s2218_s22, %s2214_s21  ;;  %p164_p4 = scmp.eq.s32.totalorder %s1481_s26, 1 }
   0xc   : > { %s2307_s30 = scalar_select %p145_p1, %s2222_s23, %s147_s28  }
   0xd   : > { %p2309_p5 = por %p158_p2, %p157_p0  ;;  %p2313_p6 = por %p164_p4, %p163_p3 }
   0xe   : > { %p1482_p7 = scmp.ge.s32.totalorder %s2226_s24, 1  ;;  %p197_p8 = scmp.lt.s32.totalorder %s2226_s24, 3 }
   0xf   : > { %p2019_p9 = scmp.eq.s32.totalorder %s2292_s25, 0  ;;  %s211_s12 = sshll.u32 %s2649_s3, 4  ;;  %s212_s12 = int_to_ptr.hbm [resolvable:$true] %s211_s12 }
  0x10   : > { %p2320_p10 = pnand %p1482_p7, %p197_p8  ;;  %s2228_s13 = smov [#allocation2]  }
  0x11   : > { %s213_s14 = sshll.u32 %s2228_s13, 4  ;;  %s225_s17 = sshll.u32 %s2650_s4, 4  ;;  %s214_s14 = int_to_ptr.vmem [resolvable:$true] %s213_s14  ;;  %s226_s17 = int_to_ptr.hbm [resolvable:$true] %s225_s17 }
  0x12   : > { %p2005_p11 = pneg %p2320_p10  ;;  %s2229_s18 = smov 64  }
  0x13   : > { %s2230_s19 = smov 4   ;;  %s2231_s20 = smov [#allocation5]  }
  0x14   : > { %p2006_p12 = pnand %p2019_p9, %p2005_p11  ;;  %s227_s26 = sshll.u32 %s2231_s20, 4  ;;  %s228_s26 = int_to_ptr.vmem [resolvable:$true] %s227_s26 }
  0x15   : > { %s2232_s28 = smov 128   ;;  %s2233_s29 = smov 8  }
  0x16   : > { %2008 = dma.hbm_to_vmem [thread:$0]  (!%p2006_p12), %s212_s12, 1024, %s214_s14, [#allocation3], %s2229_s18, %s2229_s18, %s2230_s19  }
  0x17   : > { %2011 = dma.hbm_to_vmem [thread:$0]  (!%p2006_p12), %s226_s17, 4096, %s228_s26, [#allocation6], %s2232_s28, %s2232_s28, %s2233_s29  }
  0x18   : > { %259 = sbr.rel (%p2320_p10) target bundleno = 533 (0x215), region = 40 }
  0x1d   : > { %2197 = dma.done.wait (%p2019_p9), [#allocation3], 1024  }
  0x1e   : > { %2199 = vsyncadd (%p2019_p9), [#allocation3], 4294966272 }
  0x1f   : > { %2201 = dma.done.wait (%p2019_p9), [#allocation6], 4096  }
  0x20   : > { %2203 = vsyncadd (%p2019_p9), [#allocation6], 4294963200  ;;  %v1815_v0 = vld [vmem:[#allocation5 + $0x74] sm:$0xf]  ;;  %v1587_v1 = vld [vmem:[#allocation5 + $0x78] sm:$0xf0] }
  0x21   : > { %v1831_v2 = vld [vmem:[#allocation5 + $0xf4] sm:$0xf]  ;;  %v1590_v3 = vor.u32 %v1815_v0, %v1587_v1  ;;  %v1651_v4 = vld [vmem:[#allocation5 + $0xf8] sm:$0xf0]  ;;  %v1813_v5 = vld [vmem:[#allocation5 + $0x64] sm:$0xf] }
  0x22   : > { %v1579_v6 = vld [vmem:[#allocation5 + $0x68] sm:$0xf0]  ;;  %v1654_v7 = vor.u32 %v1831_v2, %v1651_v4  ;;  %v1829_v8 = vld [vmem:[#allocation5 + $0xe4] sm:$0xf]  ;;  %v1811_v12 = vld [vmem:[#allocation5 + $0x54] sm:$0xf] }
  0x23   : > { %v1643_v9 = vld [vmem:[#allocation5 + $0xe8] sm:$0xf0]  ;;  %613 = vmatpush.bf16.msra.mxu2 %v1590_v3  ;;  %v1582_v10 = vor.u32 %v1813_v5, %v1579_v6  ;;  %v1571_v13 = vld [vmem:[#allocation5 + $0x58] sm:$0xf0]  ;;  %v1827_v14 = vld [vmem:[#allocation5 + $0xd4] sm:$0xf] }
  0x24   : > { %642 = vmatpush.bf16.msra.mxu3 %v1654_v7  ;;  %v1646_v11 = vor.u32 %v1829_v8, %v1643_v9  ;;  %v1635_v15 = vld [vmem:[#allocation5 + $0xd8] sm:$0xf0]  ;;  %v1574_v16 = vor.u32 %v1811_v12, %v1571_v13  ;;  %v1809_v18 = vld [vmem:[#allocation5 + $0x44] sm:$0xf]  ;;  %v1563_v19 = vld [vmem:[#allocation5 + $0x48] sm:$0xf0] }
  0x25   : > { %v1638_v17 = vor.u32 %v1827_v14, %v1635_v15  ;;  %v1825_v20 = vld [vmem:[#allocation5 + $0xc4] sm:$0xf]  ;;  %v1627_v21 = vld [vmem:[#allocation5 + $0xc8] sm:$0xf0]  ;;  %v1566_v22 = vor.u32 %v1809_v18, %v1563_v19  ;;  %v1807_v24 = vld [vmem:[#allocation5 + $0x34] sm:$0xf] }
  0x26   : > { %v1630_v23 = vor.u32 %v1825_v20, %v1627_v21  ;;  %v1555_v25 = vld [vmem:[#allocation5 + $0x38] sm:$0xf0]  ;;  %v1823_v26 = vld [vmem:[#allocation5 + $0xb4] sm:$0xf]  ;;  %p305_p13 = scmp.lt.s32.totalorder %s2292_s25, 1  ;;  %vm751_vm0 = vcmask 523264  }
  0x27   : > { %614 = vmatpush.bf16.msra.mxu2 %v1582_v10  ;;  %v1619_v27 = vld [vmem:[#allocation5 + $0xb8] sm:$0xf0]  ;;  %v1558_v28 = vor.u32 %v1807_v24, %v1555_v25  ;;  %v1805_v30 = vld [vmem:[#allocation5 + $0x24] sm:$0xf]  ;;  %v1547_v31 = vld [vmem:[#allocation5 + $0x28] sm:$0xf0] }
  0x28   : > { %643 = vmatpush.bf16.msra.mxu3 %v1646_v11  ;;  %v1622_v29 = vor.u32 %v1823_v26, %v1619_v27  ;;  %v1821_v32 = vld [vmem:[#allocation5 + $0xa4] sm:$0xf]  ;;  %v1611_v33 = vld [vmem:[#allocation5 + $0xa8] sm:$0xf0]  ;;  %s2346_s9 = scalar_select %p305_p13, %s2292_s25, 1  ;;  %v1550_v34 = vor.u32 %v1805_v30, %v1547_v31 }
  0x29   : > { %v1614_v35 = vor.u32 %v1821_v32, %v1611_v33  ;;  %v1803_v36 = vld [vmem:[#allocation5 + $0x14] sm:$0xf]  ;;  %v1539_v37 = vld [vmem:[#allocation5 + $0x18] sm:$0xf0]  ;;  %v1801_v42 = vld [vmem:[#allocation5 + $0x4] sm:$0xf] }
  0x2a   : > { %v1819_v38 = vld [vmem:[#allocation5 + $0x94] sm:$0xf]  ;;  %v1603_v39 = vld [vmem:[#allocation5 + $0x98] sm:$0xf0]  ;;  %s1792_s10 = sshll.u32 %s2346_s9, 6  ;;  %v1542_v40 = vor.u32 %v1803_v36, %v1539_v37  ;;  %s1791_s14 = sshll.u32 %s2346_s9, 7 }
  0x2b   : > { %615 = vmatpush.bf16.msra.mxu2 %v1574_v16  ;;  %v1606_v41 = vor.u32 %v1819_v38, %v1603_v39  ;;  %v1531_v43 = vld [vmem:[#allocation5 + $0x8] sm:$0xf0]  ;;  %s2352_s13 = scalar_lea.vmem %s2647_s1, %s1792_s10  ;;  %v1817_v44 = vld [vmem:[#allocation5 + $0x84] sm:$0xf]  ;;  %v1585_v8 = vld [vmem:[#allocation5 + $0x70] sm:$0xf]  ;;  %s2412_s17 = scalar_lea.vmem %s2646_s0, %s1791_s14 }
  0x2c   : > { %644 = vmatpush.bf16.msra.mxu3 %v1638_v17  ;;  %v1595_v45 = vld [vmem:[#allocation5 + $0x88] sm:$0xf0]  ;;  %v1534_v46 = vor.u32 %v1801_v42, %v1531_v43  ;;  %v1497_v47 = vld [vmem:[%s2352_s13] sm:$0xf]  ;;  %v1794_v48 = vld [vmem:[%s2352_s13 + $0x4] sm:$0xf0] }
  0x2d   : > { %v1598_v49 = vor.u32 %v1817_v44, %v1595_v45  ;;  %v1793_v50 = vld [vmem:[%s2352_s13 + $0x4] sm:$0xf]  ;;  %v1499_v51 = vld [vmem:[%s2352_s13 + $0x8] sm:$0xf0]  ;;  %v2358_v52 = vor.u32 %v1794_v48, %v1497_v47  ;;  %v1505_v54 = vld [vmem:[%s2352_s13 + $0x10] sm:$0xf] }
  0x2e   : > { %v2360_v53 = vor.u32 %v1793_v50, %v1499_v51  ;;  %v1796_v55 = vld [vmem:[%s2352_s13 + $0x14] sm:$0xf0]  ;;  %v1795_v56 = vld [vmem:[%s2352_s13 + $0x14] sm:$0xf]  ;;  %v1507_v57 = vld [vmem:[%s2352_s13 + $0x18] sm:$0xf0] }
  0x2f   : > { %616 = vmatpush.bf16.msra.mxu2 %v1566_v22  ;;  %v2368_v58 = vor.u32 %v1796_v55, %v1505_v54  ;;  %v2370_v59 = vor.u32 %v1795_v56, %v1507_v57  ;;  %v1513_v60 = vld [vmem:[%s2352_s13 + $0x20] sm:$0xf]  ;;  %v1798_v61 = vld [vmem:[%s2352_s13 + $0x24] sm:$0xf0]  ;;  %v1797_v62 = vld [vmem:[%s2352_s13 + $0x24] sm:$0xf] }
  0x30   : > { %645 = vmatpush.bf16.msra.mxu3 %v1630_v23  ;;  %v1515_v63 = vld [vmem:[%s2352_s13 + $0x28] sm:$0xf0]  ;;  %v2378_v0 = vor.u32 %v1798_v61, %v1513_v60  ;;  %v1521_v2 = vld [vmem:[%s2352_s13 + $0x30] sm:$0xf]  ;;  %v1800_v3 = vld [vmem:[%s2352_s13 + $0x34] sm:$0xf0] }
  0x31   : > { %v2380_v1 = vor.u32 %v1797_v62, %v1515_v63  ;;  %v1799_v4 = vld [vmem:[%s2352_s13 + $0x34] sm:$0xf]  ;;  %v1523_v5 = vld [vmem:[%s2352_s13 + $0x38] sm:$0xf0]  ;;  %v2388_v6 = vor.u32 %v1800_v3, %v1521_v2  ;;  %v1816_v9 = vld [vmem:[#allocation5 + $0x74] sm:$0xf0] }
  0x32   : > { %v2390_v7 = vor.u32 %v1799_v4, %v1523_v5  ;;  %v1649_v10 = vld [vmem:[#allocation5 + $0xf0] sm:$0xf]  ;;  %v1586_v11 = vor.u32 %v1816_v9, %v1585_v8  ;;  %v1832_v12 = vld [vmem:[#allocation5 + $0xf4] sm:$0xf0]  ;;  %v1577_v14 = vld [vmem:[#allocation5 + $0x60] sm:$0xf] }
  0x33   : > { %617 = vmatpush.bf16.msra.mxu2 %v1558_v28  ;;  %v1650_v13 = vor.u32 %v1832_v12, %v1649_v10  ;;  %v1814_v15 = vld [vmem:[#allocation5 + $0x64] sm:$0xf0]  ;;  %v1641_v16 = vld [vmem:[#allocation5 + $0xe0] sm:$0xf]  ;;  %v1569_v20 = vld [vmem:[#allocation5 + $0x50] sm:$0xf] }
  0x34   : > { %646 = vmatpush.bf16.msra.mxu3 %v1622_v29  ;;  %555 = vmatpush.bf16.msra.mxu0 %v1586_v11  ;;  %v1578_v17 = vor.u32 %v1814_v15, %v1577_v14  ;;  %v1830_v18 = vld [vmem:[#allocation5 + $0xe4] sm:$0xf0]  ;;  %v1812_v21 = vld [vmem:[#allocation5 + $0x54] sm:$0xf0]  ;;  %v1633_v22 = vld [vmem:[#allocation5 + $0xd0] sm:$0xf] }
  0x35   : > { %584 = vmatpush.bf16.msra.mxu1 %v1650_v13  ;;  %v1642_v19 = vor.u32 %v1830_v18, %v1641_v16  ;;  %v1570_v23 = vor.u32 %v1812_v21, %v1569_v20  ;;  %v1828_v24 = vld [vmem:[#allocation5 + $0xd4] sm:$0xf0]  ;;  %v1561_v26 = vld [vmem:[#allocation5 + $0x40] sm:$0xf]  ;;  %v1810_v27 = vld [vmem:[#allocation5 + $0x44] sm:$0xf0] }
  0x36   : > { %v1634_v25 = vor.u32 %v1828_v24, %v1633_v22  ;;  %v1625_v28 = vld [vmem:[#allocation5 + $0xc0] sm:$0xf]  ;;  %v1562_v29 = vor.u32 %v1810_v27, %v1561_v26  ;;  %v1826_v30 = vld [vmem:[#allocation5 + $0xc4] sm:$0xf0]  ;;  %v1553_v32 = vld [vmem:[#allocation5 + $0x30] sm:$0xf] }
  0x37   : > { %618 = vmatpush.bf16.msra.mxu2 %v1550_v34  ;;  %v1626_v31 = vor.u32 %v1826_v30, %v1625_v28  ;;  %v1808_v33 = vld [vmem:[#allocation5 + $0x34] sm:$0xf0]  ;;  %v1617_v34 = vld [vmem:[#allocation5 + $0xb0] sm:$0xf]  ;;  %v1545_v38 = vld [vmem:[#allocation5 + $0x20] sm:$0xf] }
  0x38   : > { %647 = vmatpush.bf16.msra.mxu3 %v1614_v35  ;;  %556 = vmatpush.bf16.msra.mxu0 %v1578_v17  ;;  %v1554_v35 = vor.u32 %v1808_v33, %v1553_v32  ;;  %v1824_v36 = vld [vmem:[#allocation5 + $0xb4] sm:$0xf0]  ;;  %v1806_v39 = vld [vmem:[#allocation5 + $0x24] sm:$0xf0]  ;;  %v1537_v44 = vld [vmem:[#allocation5 + $0x10] sm:$0xf] }
  0x39   : > { %585 = vmatpush.bf16.msra.mxu1 %v1642_v19  ;;  %v1618_v37 = vor.u32 %v1824_v36, %v1617_v34  ;;  %v1822_v42 = vld [vmem:[#allocation5 + $0xa4] sm:$0xf0]  ;;  %v1804_v45 = vld [vmem:[#allocation5 + $0x14] sm:$0xf0]  ;;  %v1529_v50 = vld [vmem:[#allocation5] sm:$0xf] }
  0x3a   : > { %v1538_v47 = vor.u32 %v1804_v45, %v1537_v44  ;;  %v1820_v48 = vld [vmem:[#allocation5 + $0x94] sm:$0xf0]  ;;  %v1802_v51 = vld [vmem:[#allocation5 + $0x4] sm:$0xf0]  ;;  %v1593_v54 = vld [vmem:[#allocation5 + $0x80] sm:$0xf] }
  0x3b   : > { %619 = vmatpush.bf16.msra.mxu2 %v1542_v40  ;;  %v1609_v40 = vld [vmem:[#allocation5 + $0xa0] sm:$0xf]  ;;  %v1530_v55 = vor.u32 %v1802_v51, %v1529_v50  ;;  %v1818_v56 = vld [vmem:[#allocation5 + $0x84] sm:$0xf0]  ;;  %v1856_v63 = vld [vmem:[#allocation2 + $0x38] sm:$0xff]  ;;  %s2469_s9 = sand.u32 1, %s2218_s22  }
  0x3c   : > { %648 = vmatpush.bf16.msra.mxu3 %v1606_v41  ;;  %557 = vmatpush.bf16.msra.mxu0 %v1570_v23  ;;  %v1546_v41 = vor.u32 %v1806_v39, %v1545_v38  ;;  %v1610_v43 = vor.u32 %v1822_v42, %v1609_v40  ;;  %v1594_v57 = vor.u32 %v1818_v56, %v1593_v54  ;;  %v1855_v2 = vld [vmem:[#allocation2 + $0x30] sm:$0xff]  ;;  %v1852_v5 = vld [vmem:[#allocation2 + $0x18] sm:$0xff]  ;;  %v1841_v12 = vld [vmem:[%s2412_s17 + $0x40] sm:$0xff]  ;;  %s1490_s14 = sshll.u32 %s2469_s9, 5  ;;  %s1858_s20 = sshll.u32 %s2292_s25, 5 }
  0x3d   : > { %586 = vmatpush.bf16.msra.mxu1 %v1634_v25  ;;  %v1851_v8 = vld [vmem:[#allocation2 + $0x10] sm:$0xff]  ;;  %v1842_v17 = vld [vmem:[%s2412_s17 + $0x48] sm:$0xff]  ;;  %v719_v30 = vld [vmem:[%s2648_s2] sm:$0xff]  ;;  %s2481_s15 = scalar_lea.vmem [#allocation8], %s1490_s14  ;;  %s1348_s29 = scalar_lea.hbm %s2652_s6, %s1858_s20 }
  0x3e   : > { %v1834_v18 = vld [vmem:[%s2412_s17 + $0x8] sm:$0xff]  ;;  %v1843_v25 = vld [vmem:[%s2412_s17 + $0x50] sm:$0xff]  ;;  %v1844_v34 = vld [vmem:[%s2412_s17 + $0x58] sm:$0xff]  ;;  %s1349_s19 = sshll.u32 %s2481_s15, 4  ;;  %s1351_s10 = sshll.u32 %s1348_s29, 4  ;;  %s1350_s19 = int_to_ptr.vmem [resolvable:$true] %s1349_s19  ;;  %s1352_s10 = int_to_ptr.hbm [resolvable:$true] %s1351_s10 }
  0x3f   : > { %620 = vmatpush.bf16.msra.mxu2 %v1534_v46  ;;  %v1601_v46 = vld [vmem:[#allocation5 + $0x90] sm:$0xf]  ;;  %v736_v32 = vld [vmem:[%s2648_s2 + $0x88] sm:$0xff]  ;;  %v738_v38 = vld [vmem:[%s2648_s2 + $0x98] sm:$0xff]  ;;  %s1489_s11 = sshll.u32 %s2469_s9, 7  ;;  %s1320_s12 = scalar_lea.sflag [#allocation9], %s2469_s9 }
  0x40   : > { %649 = vmatpush.bf16.msra.mxu3 %v1598_v49  ;;  %558 = vmatpush.bf16.msra.mxu0 %v1562_v29  ;;  %v1602_v49 = vor.u32 %v1820_v48, %v1601_v46  ;;  %v735_v29 = vld [vmem:[%s2648_s2 + $0x80] sm:$0xff]  ;;  %v720_v33 = vld [vmem:[%s2648_s2 + $0x8] sm:$0xff]  ;;  %v721_v36 = vld [vmem:[%s2648_s2 + $0x10] sm:$0xff]  ;;  %s2138_s13 = sshra.s32 %s1352_s10, 4  ;;  %s2144_s16 = scalar_lea.hbm %s2652_s6, 64  ;;  %s2139_s13 = int_to_ptr.hbm [resolvable:$true] %s2138_s13 }
  0x41   : > { %587 = vmatpush.bf16.msra.mxu1 %v1626_v31  ;;  %v1835_v31 = vld [vmem:[%s2412_s17 + $0x10] sm:$0xff]  ;;  %v722_v39 = vld [vmem:[%s2648_s2 + $0x18] sm:$0xff]  ;;  %v1845_v40 = vld [vmem:[%s2412_s17 + $0x60] sm:$0xff]  ;;  %s2140_s14 = scalar_lea.hbm %s2139_s13, 32  ;;  %p2145_p3 = scmp.lt.s32.totalorder %s2139_s13, %s2652_s6 }
  0x42   : > { %621 = vmatmul.bf16.vlgmr.msra.gmra.mxu2 %v2358_v52  ;;  %v723_v44 = vld [vmem:[%s2648_s2 + $0x20] sm:$0xff]  ;;  %v724_v50 = vld [vmem:[%s2648_s2 + $0x28] sm:$0xff]  ;;  %p2141_p0 = scmp.ne.s32.totalorder %s2139_s13, %s2140_s14  ;;  %p2146_p4 = scmp.lt.s32.totalorder %s2144_s16, %s2140_s14 }
  0x43   : > { %650 = vmatmul.bf16.vlgmr.msra.gmra.mxu3 %v2360_v53  ;;  %v1837_v45 = vld [vmem:[%s2412_s17 + $0x20] sm:$0xff] }
  0x44   : > { %559 = vmatpush.bf16.msra.mxu0 %v1554_v35  ;;  %1985 = vmatpush.bf16.msrb.mxu3 %v1856_v63  ;;  %v737_v35 = vld [vmem:[%s2648_s2 + $0x90] sm:$0xff]  ;;  %p2142_p1 = pnand %p2141_p0, %p2309_p5  ;;  %p2147_p7 = por %p2146_p4, %p2145_p3 }
  0x45   : > { %588 = vmatpush.bf16.msra.mxu1 %v1618_v37  ;;  %v1836_v37 = vld [vmem:[%s2412_s17 + $0x18] sm:$0xff] }
  0x46   : > { %p2143_p2 = pneg %p2142_p1 }
  0x48   : > { %560 = vmatpush.bf16.msra.mxu0 %v1546_v41  ;;  %1986 = vmatpush.bf16.msrb.mxu3 %v1855_v2  ;;  %p2148_p8 = pnand %p2147_p7, %p2143_p2 }
  0x49   : > { %589 = vmatpush.bf16.msra.mxu1 %v1610_v43  ;;  %v739_v43 = vld [vmem:[%s2648_s2 + $0xa0] sm:$0xff] }
  0x4c   : > { %561 = vmatpush.bf16.msra.mxu0 %v1538_v47 }
  0x4d   : > { %590 = vmatpush.bf16.msra.mxu1 %v1602_v49  ;;  %v740_v49 = vld [vmem:[%s2648_s2 + $0xa8] sm:$0xff] }
  0x50   : > { %562 = vmatpush.bf16.msra.mxu0 %v1530_v55  ;;  %v1846_v55 = vld [vmem:[%s2412_s17 + $0x68] sm:$0xff] }
  0x51   : > { %591 = vmatpush.bf16.msra.mxu1 %v1594_v57 }
  0x52   : > { %626 = vmatmul.bf16.gmra.mxu2 %v2368_v58 }
  0x53   : > { %655 = vmatmul.bf16.gmra.mxu3 %v2370_v59  ;;  %563 = vmatmul.bf16.vlgmr.msra.gmra.mxu0 %v2358_v52  ;;  %v1854_v52 = vld [vmem:[#allocation2 + $0x28] sm:$0xff] }
  0x54   : > { %592 = vmatmul.bf16.vlgmr.msra.gmra.mxu1 %v2360_v53  ;;  %1987 = vmatpush.bf16.msrb.mxu3 %v1854_v52  ;;  %v1853_v53 = vld [vmem:[#allocation2 + $0x20] sm:$0xff] }
  0x55   : > { %1105 = vmatpush.bf16.msrb.mxu1 %v1856_v63  ;;  %v725_v63 = vld [vmem:[%s2648_s2 + $0x30] sm:$0xff] }
  0x58   : > { %1988 = vmatpush.bf16.msrb.mxu3 %v1853_v53 }
  0x59   : > { %1106 = vmatpush.bf16.msrb.mxu1 %v1855_v2  ;;  %v1838_v2 = vld [vmem:[%s2412_s17 + $0x28] sm:$0xff] }
  0x5c   : > { %1989 = vmatpush.bf16.msrb.mxu3 %v1852_v5 }
  0x5d   : > { %1107 = vmatpush.bf16.msrb.mxu1 %v1854_v52 }
  0x60   : > { %1990 = vmatpush.bf16.msrb.mxu3 %v1851_v8 }
  0x61   : > { %1108 = vmatpush.bf16.msrb.mxu1 %v1853_v53  ;;  %v742_v53 = vld [vmem:[%s2648_s2 + $0xb8] sm:$0xff] }
  0x62   : > { %631 = vmatmul.bf16.gmra.mxu2 %v2378_v0 }
  0x63   : > { %660 = vmatmul.bf16.gmra.mxu3 %v2380_v1  ;;  %568 = vmatmul.bf16.gmra.mxu0 %v2368_v58 }
  0x64   : > { %597 = vmatmul.bf16.gmra.mxu1 %v2370_v59 }
  0x65   : > { %1109 = vmatpush.bf16.msrb.mxu1 %v1852_v5 }
  0x69   : > { %1110 = vmatpush.bf16.msrb.mxu1 %v1851_v8  ;;  %v1847_v8 = vld [vmem:[%s2412_s17 + $0x70] sm:$0xff] }
  0x72   : > { %636 = vmatmul.bf16.gmra.mxu2 %v2388_v6 }
  0x73   : > { %665 = vmatmul.bf16.gmra.mxu3 %v2390_v7  ;;  %573 = vmatmul.bf16.gmra.mxu0 %v2378_v0  ;;  %v1850_v0 = vld [vmem:[#allocation2 + $0x8] sm:$0xff] }
  0x74   : > { %602 = vmatmul.bf16.gmra.mxu1 %v2380_v1  ;;  %1991 = vmatpush.bf16.msrb.mxu3 %v1850_v0  ;;  %v1849_v1 = vld [vmem:[#allocation2] sm:$0xff] }
  0x75   : > { %1111 = vmatpush.bf16.msrb.mxu1 %v1850_v0 }
  0x78   : > { %1992 = vmatpush.bf16.msrb.mxu3 %v1849_v1 }
  0x79   : > { %1112 = vmatpush.bf16.msrb.mxu1 %v1849_v1 }
  0x83   : > { %578 = vmatmul.bf16.gmra.mxu0 %v2388_v6  ;;  %1153 = vmatmul.bf16.vlgmr.msrb.gmra.mxu3 %v1841_v12  ;;  %v1839_v12 = vld [vmem:[%s2412_s17 + $0x30] sm:$0xff] }
  0x84   : > { %607 = vmatmul.bf16.gmra.mxu1 %v2390_v7  ;;  %v1833_v7 = vld [vmem:[%s2412_s17] sm:$0xff] }
  0x93   : > { %1158 = vmatmul.bf16.gmra.mxu3 %v1842_v17 }
  0x94   : > { %1113 = vmatmul.bf16.vlgmr.msrb.gmra.mxu1 %v1833_v7 }
  0xa3   : > { %1163 = vmatmul.bf16.gmra.mxu3 %v1843_v25  ;;  %v729_v25 = vld [vmem:[%s2648_s2 + $0x50] sm:$0xff] }
  0xa4   : > { %1118 = vmatmul.bf16.gmra.mxu1 %v1834_v18 }
  0xb3   : > { %1168 = vmatmul.bf16.gmra.mxu3 %v1844_v34 }
  0xb4   : > { %1123 = vmatmul.bf16.gmra.mxu1 %v1835_v31  ;;  %v730_v31 = vld [vmem:[%s2648_s2 + $0x58] sm:$0xff] }
  0xc3   : > { %1173 = vmatmul.bf16.gmra.mxu3 %v1845_v40  ;;  %v732_v40 = vld [vmem:[%s2648_s2 + $0x68] sm:$0xff] }
  0xc4   : > { %1128 = vmatmul.bf16.gmra.mxu1 %v1836_v37  ;;  %v731_v37 = vld [vmem:[%s2648_s2 + $0x60] sm:$0xff] }
  0xc5   : > { %v622_v60 = vpop.f32.mrf.mxu2 }
  0xc6   : > { %v651_v61 = vpop.f32.mrf.mxu3 }
  0xc7   : > { %v2398_v62 = vadd.f32 %v651_v61, %v622_v60 }
  0xcd   : > { %v2400_v3 = vpop.f32.mrf.mxu2 }
  0xce   : > { %v2402_v4 = vpop.f32.mrf.mxu3 }
  0xcf   : > { %v654_v28 = vadd.f32 %v2402_v4, %v2400_v3 }
  0xd0   : > { %v564_v41 = vpop.f32.mrf.mxu0 }
  0xd1   : > { %v593_v42 = vpop.f32.mrf.mxu1 }
  0xd2   : > { %v594_v46 = vadd.f32 %v593_v42, %v564_v41 }
  0xd3   : > { %1178 = vmatmul.bf16.gmra.mxu3 %v1846_v55 }
  0xd4   : > { %1133 = vmatmul.bf16.gmra.mxu1 %v1837_v45  ;;  %v1290_v51 = vmax.f32 %v594_v46, 0.0 }
  0xd5   : > { %v627_v58 = vpop.f32.mrf.mxu2 }
  0xd6   : > { %v656_v59 = vpop.f32.mrf.mxu3 }
  0xd7   : > { %v657_v27 = vadd.f32 %v656_v59, %v627_v58  ;;  %v726_v58 = vld [vmem:[%s2648_s2 + $0x38] sm:$0xff] }
  0xd8   : > { %v566_v47 = vpop.f32.mrf.mxu0 }
  0xd9   : > { %v595_v48 = vpop.f32.mrf.mxu1 }
  0xda   : > { %v596_v54 = vadd.f32 %v595_v48, %v566_v47  ;;  %v750_v47 = vld [vmem:[%s2648_s2 + $0xf8] sm:$0xff] }
  0xdb   : > { %v734_v48 = vld [vmem:[%s2648_s2 + $0x78] sm:$0xff] }
  0xdc   : > { %v1291_v56 = vmax.f32 %v596_v54, 0.0 }
  0xdd   : > { %v629_v9 = vpop.f32.mrf.mxu2 }
  0xde   : > { %v658_v10 = vpop.f32.mrf.mxu3  ;;  %v1942_v57 = vpack.c.bf16 %v1291_v56, %v1290_v51 }
  0xdf   : > { %v659_v26 = vadd.f32 %v658_v10, %v629_v9 }
  0xe0   : > { %1943 = vst [vmem:[%s2481_s15] sm:$0xff] %v1942_v57   ;;  %v569_v60 = vpop.f32.mrf.mxu0 }
  0xe1   : > { %v598_v61 = vpop.f32.mrf.mxu1 }
  0xe2   : > { %v599_v3 = vadd.f32 %v598_v61, %v569_v60 }
  0xe3   : > { %1183 = vmatmul.bf16.gmra.mxu3 %v1847_v8 }
  0xe4   : > { %1138 = vmatmul.bf16.gmra.mxu1 %v1838_v2  ;;  %v1292_v59 = vmax.f32 %v599_v3, 0.0 }
  0xe5   : > { %v632_v11 = vpop.f32.mrf.mxu2 }
  0xe6   : > { %v661_v6 = vpop.f32.mrf.mxu3 }
  0xe7   : > { %v662_v24 = vadd.f32 %v661_v6, %v632_v11  ;;  %v743_v11 = vld [vmem:[%s2648_s2 + $0xc0] sm:$0xff] }
  0xe8   : > { %v571_v4 = vpop.f32.mrf.mxu0  ;;  %v727_v6 = vld [vmem:[%s2648_s2 + $0x40] sm:$0xff] }
  0xe9   : > { %v600_v52 = vpop.f32.mrf.mxu1 }
  0xea   : > { %v601_v5 = vadd.f32 %v600_v52, %v571_v4 }
  0xec   : > { %v1293_v9 = vmax.f32 %v601_v5, 0.0 }
  0xed   : > { %v634_v13 = vpop.f32.mrf.mxu2 }
  0xee   : > { %v663_v14 = vpop.f32.mrf.mxu3  ;;  %v1947_v10 = vpack.c.bf16 %v1293_v9, %v1292_v59 }
  0xef   : > { %v664_v23 = vadd.f32 %v663_v14, %v634_v13 }
  0xf0   : > { %1974 = vst [vmem:[%s2481_s15 + $0x8] sm:$0xff] %v1947_v10   ;;  %v574_v0 = vpop.f32.mrf.mxu0 }
  0xf1   : > { %v603_v1 = vpop.f32.mrf.mxu1 }
  0xf2   : > { %v604_v7 = vadd.f32 %v603_v1, %v574_v0 }
  0xf4   : > { %1143 = vmatmul.bf16.gmra.mxu1 %v1839_v12  ;;  %v1294_v17 = vmax.f32 %v604_v7, 0.0 }
  0xf5   : > { %v637_v15 = vpop.f32.mrf.mxu2 }
  0xf6   : > { %v666_v16 = vpop.f32.mrf.mxu3 }
  0xf7   : > { %v667_v22 = vadd.f32 %v666_v16, %v637_v15  ;;  %v744_v15 = vld [vmem:[%s2648_s2 + $0xc8] sm:$0xff] }
  0xf8   : > { %v576_v13 = vpop.f32.mrf.mxu0  ;;  %v728_v16 = vld [vmem:[%s2648_s2 + $0x48] sm:$0xff] }
  0xf9   : > { %v605_v14 = vpop.f32.mrf.mxu1 }
  0xfa   : > { %v606_v18 = vadd.f32 %v605_v14, %v576_v13 }
  0xfd   : > { %v639_v19 = vpop.f32.mrf.mxu2 }
  0xfe   : > { %v668_v20 = vpop.f32.mrf.mxu3 }
  0xff   : > { %v669_v21 = vadd.f32 %v668_v20, %v639_v19  ;;  %v1848_v19 = vld [vmem:[%s2412_s17 + $0x78] sm:$0xff]  ;;  %v1295_v20 = vmax.f32 %v606_v18, 0.0 }
 0x100   : > { %1188 = vmatmul.bf16.gmra.mxu3 %v1848_v19 }
 0x101   : > { %856 = vmatpush.msrb.mxu0 %v669_v21  ;;  %1977 = vmatpush.msrb.mxu2 %v669_v21  ;;  %v1952_v21 = vpack.c.bf16 %v1295_v20, %v1294_v17 }
 0x103   : > { %857 = vmatpush.msrb.mxu0 %v667_v22  ;;  %1978 = vmatpush.msrb.mxu2 %v667_v22  ;;  %1975 = vst [vmem:[%s2481_s15 + $0x10] sm:$0xff] %v1952_v21   ;;  %v579_v22 = vpop.f32.mrf.mxu0 }
 0x105   : > { %858 = vmatpush.msrb.mxu0 %v664_v23  ;;  %1979 = vmatpush.msrb.mxu2 %v664_v23  ;;  %v608_v23 = vpop.f32.mrf.mxu1 }
 0x106   : > { %v1154_v41 = vpop.f32.mrf.mxu3 }
 0x107   : > { %859 = vmatpush.msrb.mxu0 %v662_v24  ;;  %1980 = vmatpush.msrb.mxu2 %v662_v24  ;;  %v745_v24 = vld [vmem:[%s2648_s2 + $0xd0] sm:$0xff] }
 0x109   : > { %860 = vmatpush.msrb.mxu0 %v659_v26  ;;  %1981 = vmatpush.msrb.mxu2 %v659_v26  ;;  %v1840_v26 = vld [vmem:[%s2412_s17 + $0x38] sm:$0xff] }
 0x10a   : > { %1148 = vmatmul.bf16.gmra.mxu1 %v1840_v26 }
 0x10b   : > { %861 = vmatpush.msrb.mxu0 %v657_v27  ;;  %1982 = vmatpush.msrb.mxu2 %v657_v27  ;;  %v609_v27 = vadd.f32 %v608_v23, %v579_v22 }
 0x10d   : > { %862 = vmatpush.msrb.mxu0 %v654_v28  ;;  %1983 = vmatpush.msrb.mxu2 %v654_v28  ;;  %v581_v28 = vpop.f32.mrf.mxu0 }
 0x10e   : > { %v1156_v45 = vpop.f32.mrf.mxu3 }
 0x10f   : > { %863 = vmatpush.msrb.mxu0 %v2398_v62  ;;  %1984 = vmatpush.msrb.mxu2 %v2398_v62  ;;  %v741_v62 = vld [vmem:[%s2648_s2 + $0xb0] sm:$0xff] }
 0x110   : > { %1671 = vmatmul.msk.f32.vlgmr.msrb.gmra.mxu2 %vm751_vm0, %v735_v29  ;;  %1655 = vmatmul.msk.f32.vlgmr.msrb.gmra.mxu0 %vm751_vm0, %v719_v30  ;;  %v610_v29 = vpop.f32.mrf.mxu1  ;;  %v746_v30 = vld [vmem:[%s2648_s2 + $0xd8] sm:$0xff] }
 0x118   : > { %1672 = vmatmul.msk.f32.gmra.mxu2 %vm751_vm0, %v736_v32  ;;  %1656 = vmatmul.msk.f32.gmra.mxu0 %vm751_vm0, %v720_v33  ;;  %v1296_v32 = vmax.f32 %v609_v27, 0.0  ;;  %v611_v33 = vadd.f32 %v610_v29, %v581_v28 }
 0x11a   : > { %v1297_v34 = vmax.f32 %v611_v33, 0.0 }
 0x120   : > { %1673 = vmatmul.msk.f32.gmra.mxu2 %vm751_vm0, %v737_v35  ;;  %1657 = vmatmul.msk.f32.gmra.mxu0 %vm751_vm0, %v721_v36  ;;  %v1957_v35 = vpack.c.bf16 %v1297_v34, %v1296_v32  ;;  %v747_v36 = vld [vmem:[%s2648_s2 + $0xe0] sm:$0xff] }
 0x122   : > { %1976 = vst [vmem:[%s2481_s15 + $0x18] sm:$0xff] %v1957_v35  }
 0x128   : > { %1674 = vmatmul.msk.f32.gmra.mxu2 %vm751_vm0, %v738_v38  ;;  %1658 = vmatmul.msk.f32.gmra.mxu0 %vm751_vm0, %v722_v39  ;;  %v1114_v38 = vpop.f32.mrf.mxu1  ;;  %v748_v39 = vld [vmem:[%s2648_s2 + $0xe8] sm:$0xff] }
 0x130   : > { %1675 = vmatmul.msk.f32.gmra.mxu2 %vm751_vm0, %v739_v43  ;;  %1659 = vmatmul.msk.f32.gmra.mxu0 %vm751_vm0, %v723_v44  ;;  %v1116_v42 = vpop.f32.mrf.mxu1  ;;  %v749_v43 = vld [vmem:[%s2648_s2 + $0xf0] sm:$0xff] }
 0x131   : > { %v733_v44 = vld [vmem:[%s2648_s2 + $0x70] sm:$0xff] }
 0x138   : > { %1676 = vmatmul.msk.f32.gmra.mxu2 %vm751_vm0, %v740_v49  ;;  %1660 = vmatmul.msk.f32.gmra.mxu0 %vm751_vm0, %v724_v50  ;;  %v1119_v46 = vpop.f32.mrf.mxu1  ;;  %v1159_v49 = vpop.f32.mrf.mxu3 }
 0x140   : > { %1677 = vmatmul.msk.f32.gmra.mxu2 %vm751_vm0, %v741_v62  ;;  %1661 = vmatmul.msk.f32.gmra.mxu0 %vm751_vm0, %v725_v63  ;;  %v1121_v51 = vpop.f32.mrf.mxu1  ;;  %v1161_v55 = vpop.f32.mrf.mxu3 }
 0x148   : > { %1678 = vmatmul.msk.f32.gmra.mxu2 %vm751_vm0, %v742_v53  ;;  %1662 = vmatmul.msk.f32.gmra.mxu0 %vm751_vm0, %v726_v58 }
 0x150   : > { %1679 = vmatmul.msk.f32.gmra.mxu2 %vm751_vm0, %v743_v11  ;;  %1663 = vmatmul.msk.f32.gmra.mxu0 %vm751_vm0, %v727_v6 }
 0x158   : > { %1680 = vmatmul.msk.f32.gmra.mxu2 %vm751_vm0, %v744_v15  ;;  %1664 = vmatmul.msk.f32.gmra.mxu0 %vm751_vm0, %v728_v16 }
 0x160   : > { %1681 = vmatmul.msk.f32.gmra.mxu2 %vm751_vm0, %v745_v24  ;;  %1665 = vmatmul.msk.f32.gmra.mxu0 %vm751_vm0, %v729_v25 }
 0x168   : > { %1682 = vmatmul.msk.f32.gmra.mxu2 %vm751_vm0, %v746_v30  ;;  %1666 = vmatmul.msk.f32.gmra.mxu0 %vm751_vm0, %v730_v31 }
 0x170   : > { %1683 = vmatmul.msk.f32.gmra.mxu2 %vm751_vm0, %v747_v36  ;;  %1667 = vmatmul.msk.f32.gmra.mxu0 %vm751_vm0, %v731_v37 }
 0x178   : > { %1684 = vmatmul.msk.f32.gmra.mxu2 %vm751_vm0, %v748_v39  ;;  %1668 = vmatmul.msk.f32.gmra.mxu0 %vm751_vm0, %v732_v40 }
 0x180   : > { %1685 = vmatmul.msk.f32.gmra.mxu2 %vm751_vm0, %v749_v43  ;;  %1669 = vmatmul.msk.f32.gmra.mxu0 %vm751_vm0, %v733_v44 }
 0x188   : > { %1686 = vmatmul.msk.f32.gmra.mxu2 %vm751_vm0, %v750_v47  ;;  %1670 = vmatmul.msk.f32.gmra.mxu0 %vm751_vm0, %v734_v48 }
 0x18d   : > { %v865_v50 = vpop.f32.mrf.mxu0 }
 0x18e   : > { %v1115_v56 = vadd.f32 %v1114_v38, %v865_v50 }
 0x193   : > { %v913_v54 = vpop.f32.mrf.mxu2 }
 0x195   : > { %v868_v57 = vpop.f32.mrf.mxu0 }
 0x196   : > { %v1117_v60 = vadd.f32 %v1116_v42, %v868_v57 }
 0x197   : > { %2151 = shalt.err (!%p2148_p8)
}
 0x198   : > { %s2234_s26 = smov 64   ;;  %s2235_s28 = smov 4   ;;  %v1124_v61 = vpop.f32.mrf.mxu1  ;;  %v1194_v62 = vmax.f32 %v1115_v56, 0.0  ;;  %v1195_v63 = vmax.f32 %v1117_v60, 0.0  ;;  %v1155_v2 = vadd.f32 %v1154_v41, %v913_v54  ;;  %v1164_v58 = vpop.f32.mrf.mxu3 }
 0x199   : > { %2002 = dma.vmem_to_hbm [thread:$0]  (%p2309_p5), %s1350_s19, 512, %s1352_s10, %s1320_s12, %s2234_s26, %s2234_s26, %s2235_s28  }
 0x19a   : > { %v1862_v3 = vpack.c.bf16 %v1195_v63, %v1194_v62  ;;  %s2592_s29 = scalar_lea.vmem [#allocation7], %s1489_s11  ;;  %v1210_v59 = vmax.f32 %v1155_v2, 0.0  ;;  %s1857_s19 = sshll.u32 %s2292_s25, 7 }
 0x19b   : > { %v916_v4 = vpop.f32.mrf.mxu2  ;;  %s1331_s12 = scalar_lea.hbm %s2651_s5, %s1857_s19  ;;  %s1332_s13 = sshll.u32 %s2592_s29, 4  ;;  %s1333_s13 = int_to_ptr.vmem [resolvable:$true] %s1332_s13 }
 0x19c   : > { %1863 = vst [vmem:[%s2592_s29] sm:$0xff] %v1862_v3   ;;  %v1157_v52 = vadd.f32 %v1156_v45, %v916_v4  ;;  %s1334_s14 = sshll.u32 %s1331_s12, 4  ;;  %s1315_s25 = scalar_lea.sflag [#allocation4], %s2469_s9  ;;  %s1335_s14 = int_to_ptr.hbm [resolvable:$true] %s1334_s14 }
 0x19d   : > { %v871_v53 = vpop.f32.mrf.mxu0  ;;  %s2166_s15 = sshra.s32 %s1335_s14, 4  ;;  %s2172_s20 = scalar_lea.hbm %s2651_s5, 256  ;;  %s2167_s15 = int_to_ptr.hbm [resolvable:$true] %s2166_s15 }
 0x19e   : > { %v1211_v5 = vmax.f32 %v1157_v52, 0.0  ;;  %v1120_v0 = vadd.f32 %v1119_v46, %v871_v53  ;;  %s2168_s17 = scalar_lea.hbm %s2167_s15, 128  ;;  %p2173_p12 = scmp.lt.s32.totalorder %s2167_s15, %s2651_s5 }
 0x19f   : > { %p2169_p9 = scmp.ne.s32.totalorder %s2167_s15, %s2168_s17  ;;  %p2174_p13 = scmp.lt.s32.totalorder %s2172_s20, %s2168_s17 }
 0x1a0   : > { %v1902_v8 = vpack.c.bf16 %v1211_v5, %v1210_v59  ;;  %v1126_v9 = vpop.f32.mrf.mxu1  ;;  %v1166_v6 = vpop.f32.mrf.mxu3  ;;  %v1196_v12 = vmax.f32 %v1120_v0, 0.0 }
 0x1a1   : > { %p2170_p10 = pnand %p2169_p9, %p2309_p5  ;;  %p2175_p0 = por %p2174_p13, %p2173_p12 }
 0x1a2   : > { %1966 = vst [vmem:[%s2592_s29 + $0x40] sm:$0xff] %v1902_v8  }
 0x1a3   : > { %v919_v10 = vpop.f32.mrf.mxu2  ;;  %p2171_p11 = pneg %p2170_p10 }
 0x1a4   : > { %v1160_v13 = vadd.f32 %v1159_v49, %v919_v10 }
 0x1a5   : > { %v874_v1 = vpop.f32.mrf.mxu0  ;;  %p2176_p1 = pnand %p2175_p0, %p2171_p11 }
 0x1a6   : > { %v1122_v11 = vadd.f32 %v1121_v51, %v874_v1  ;;  %v1212_v19 = vmax.f32 %v1160_v13, 0.0 }
 0x1a8   : > { %v1197_v7 = vmax.f32 %v1122_v11, 0.0  ;;  %v1129_v16 = vpop.f32.mrf.mxu1  ;;  %v1169_v22 = vpop.f32.mrf.mxu3 }
 0x1aa   : > { %v1867_v14 = vpack.c.bf16 %v1197_v7, %v1196_v12 }
 0x1ab   : > { %v922_v15 = vpop.f32.mrf.mxu2 }
 0x1ac   : > { %1959 = vst [vmem:[%s2592_s29 + $0x8] sm:$0xff] %v1867_v14   ;;  %v1162_v17 = vadd.f32 %v1161_v55, %v922_v15 }
 0x1ad   : > { %v877_v18 = vpop.f32.mrf.mxu0 }
 0x1ae   : > { %v1213_v20 = vmax.f32 %v1162_v17, 0.0  ;;  %v1125_v24 = vadd.f32 %v1124_v61, %v877_v18 }
 0x1b0   : > { %v1907_v21 = vpack.c.bf16 %v1213_v20, %v1212_v19  ;;  %v1131_v26 = vpop.f32.mrf.mxu1  ;;  %v1198_v28 = vmax.f32 %v1125_v24, 0.0  ;;  %v1171_v33 = vpop.f32.mrf.mxu3 }
 0x1b2   : > { %1967 = vst [vmem:[%s2592_s29 + $0x48] sm:$0xff] %v1907_v21  }
 0x1b3   : > { %v925_v23 = vpop.f32.mrf.mxu2 }
 0x1b4   : > { %v1165_v30 = vadd.f32 %v1164_v58, %v925_v23 }
 0x1b5   : > { %v880_v25 = vpop.f32.mrf.mxu0 }
 0x1b6   : > { %v1127_v27 = vadd.f32 %v1126_v9, %v880_v25  ;;  %v1214_v36 = vmax.f32 %v1165_v30, 0.0 }
 0x1b8   : > { %v1199_v29 = vmax.f32 %v1127_v27, 0.0  ;;  %v1134_v38 = vpop.f32.mrf.mxu1  ;;  %v1174_v43 = vpop.f32.mrf.mxu3 }
 0x1ba   : > { %v1872_v31 = vpack.c.bf16 %v1199_v29, %v1198_v28 }
 0x1bb   : > { %v928_v32 = vpop.f32.mrf.mxu2 }
 0x1bc   : > { %1960 = vst [vmem:[%s2592_s29 + $0x10] sm:$0xff] %v1872_v31   ;;  %v1167_v34 = vadd.f32 %v1166_v6, %v928_v32 }
 0x1bd   : > { %v883_v35 = vpop.f32.mrf.mxu0 }
 0x1be   : > { %v1215_v37 = vmax.f32 %v1167_v34, 0.0  ;;  %v1130_v41 = vadd.f32 %v1129_v16, %v883_v35 }
 0x1c0   : > { %v1912_v39 = vpack.c.bf16 %v1215_v37, %v1214_v36  ;;  %v1200_v45 = vmax.f32 %v1130_v41, 0.0  ;;  %v1136_v47 = vpop.f32.mrf.mxu1  ;;  %v1176_v57 = vpop.f32.mrf.mxu3 }
 0x1c2   : > { %1968 = vst [vmem:[%s2592_s29 + $0x50] sm:$0xff] %v1912_v39  }
 0x1c3   : > { %v931_v40 = vpop.f32.mrf.mxu2 }
 0x1c4   : > { %v1170_v48 = vadd.f32 %v1169_v22, %v931_v40 }
 0x1c5   : > { %v886_v42 = vpop.f32.mrf.mxu0 }
 0x1c6   : > { %v1132_v44 = vadd.f32 %v1131_v26, %v886_v42  ;;  %v1216_v55 = vmax.f32 %v1170_v48, 0.0 }
 0x1c8   : > { %v1201_v46 = vmax.f32 %v1132_v44, 0.0  ;;  %v1139_v62 = vpop.f32.mrf.mxu1  ;;  %v1179_v53 = vpop.f32.mrf.mxu3 }
 0x1ca   : > { %v1877_v49 = vpack.c.bf16 %v1201_v46, %v1200_v45 }
 0x1cb   : > { %v934_v50 = vpop.f32.mrf.mxu2 }
 0x1cc   : > { %1961 = vst [vmem:[%s2592_s29 + $0x18] sm:$0xff] %v1877_v49   ;;  %v1172_v51 = vadd.f32 %v1171_v33, %v934_v50 }
 0x1cd   : > { %v889_v54 = vpop.f32.mrf.mxu0 }
 0x1ce   : > { %v1217_v56 = vmax.f32 %v1172_v51, 0.0  ;;  %v1135_v63 = vadd.f32 %v1134_v38, %v889_v54 }
 0x1d0   : > { %v1917_v60 = vpack.c.bf16 %v1217_v56, %v1216_v55  ;;  %v1202_v4 = vmax.f32 %v1135_v63, 0.0  ;;  %v1141_v10 = vpop.f32.mrf.mxu1  ;;  %v1181_v12 = vpop.f32.mrf.mxu3 }
 0x1d2   : > { %1969 = vst [vmem:[%s2592_s29 + $0x58] sm:$0xff] %v1917_v60  }
 0x1d3   : > { %v937_v61 = vpop.f32.mrf.mxu2 }
 0x1d4   : > { %v1175_v58 = vadd.f32 %v1174_v43, %v937_v61 }
 0x1d5   : > { %v892_v2 = vpop.f32.mrf.mxu0 }
 0x1d6   : > { %v1137_v3 = vadd.f32 %v1136_v47, %v892_v2  ;;  %v1218_v0 = vmax.f32 %v1175_v58, 0.0 }
 0x1d8   : > { %v1203_v52 = vmax.f32 %v1137_v3, 0.0  ;;  %v1144_v15 = vpop.f32.mrf.mxu1  ;;  %v1184_v23 = vpop.f32.mrf.mxu3 }
 0x1da   : > { %v1882_v59 = vpack.c.bf16 %v1203_v52, %v1202_v4 }
 0x1db   : > { %v940_v5 = vpop.f32.mrf.mxu2 }
 0x1dc   : > { %1962 = vst [vmem:[%s2592_s29 + $0x20] sm:$0xff] %v1882_v59   ;;  %v1177_v8 = vadd.f32 %v1176_v57, %v940_v5 }
 0x1dd   : > { %v895_v9 = vpop.f32.mrf.mxu0 }
 0x1de   : > { %v1219_v1 = vmax.f32 %v1177_v8, 0.0  ;;  %v1140_v7 = vadd.f32 %v1139_v62, %v895_v9 }
 0x1e0   : > { %v1922_v11 = vpack.c.bf16 %v1219_v1, %v1218_v0  ;;  %v1204_v16 = vmax.f32 %v1140_v7, 0.0  ;;  %v1146_v27 = vpop.f32.mrf.mxu1  ;;  %v1186_v32 = vpop.f32.mrf.mxu3 }
 0x1e2   : > { %1970 = vst [vmem:[%s2592_s29 + $0x60] sm:$0xff] %v1922_v11  }
 0x1e3   : > { %v943_v6 = vpop.f32.mrf.mxu2 }
 0x1e4   : > { %v1180_v18 = vadd.f32 %v1179_v53, %v943_v6 }
 0x1e5   : > { %v898_v13 = vpop.f32.mrf.mxu0 }
 0x1e6   : > { %v1142_v14 = vadd.f32 %v1141_v10, %v898_v13  ;;  %v1220_v24 = vmax.f32 %v1180_v18, 0.0 }
 0x1e8   : > { %v1205_v17 = vmax.f32 %v1142_v14, 0.0  ;;  %v1149_v38 = vpop.f32.mrf.mxu1  ;;  %v1189_v44 = vpop.f32.mrf.mxu3 }
 0x1ea   : > { %v1887_v19 = vpack.c.bf16 %v1205_v17, %v1204_v16 }
 0x1eb   : > { %v946_v20 = vpop.f32.mrf.mxu2 }
 0x1ec   : > { %1963 = vst [vmem:[%s2592_s29 + $0x28] sm:$0xff] %v1887_v19   ;;  %v1182_v21 = vadd.f32 %v1181_v12, %v946_v20 }
 0x1ed   : > { %v901_v22 = vpop.f32.mrf.mxu0 }
 0x1ee   : > { %v1221_v25 = vmax.f32 %v1182_v21, 0.0  ;;  %v1145_v29 = vadd.f32 %v1144_v15, %v901_v22 }
 0x1f0   : > { %v1927_v26 = vpack.c.bf16 %v1221_v25, %v1220_v24  ;;  %v1206_v33 = vmax.f32 %v1145_v29, 0.0  ;;  %v1151_v48 = vpop.f32.mrf.mxu1  ;;  %v1191_v57 = vpop.f32.mrf.mxu3 }
 0x1f2   : > { %1971 = vst [vmem:[%s2592_s29 + $0x68] sm:$0xff] %v1927_v26  }
 0x1f3   : > { %v949_v28 = vpop.f32.mrf.mxu2 }
 0x1f4   : > { %v1185_v35 = vadd.f32 %v1184_v23, %v949_v28 }
 0x1f5   : > { %v904_v30 = vpop.f32.mrf.mxu0 }
 0x1f6   : > { %v1147_v31 = vadd.f32 %v1146_v27, %v904_v30  ;;  %v1222_v41 = vmax.f32 %v1185_v35, 0.0 }
 0x1f8   : > { %v1207_v34 = vmax.f32 %v1147_v31, 0.0 }
 0x1fa   : > { %v1892_v36 = vpack.c.bf16 %v1207_v34, %v1206_v33 }
 0x1fb   : > { %v952_v37 = vpop.f32.mrf.mxu2 }
 0x1fc   : > { %1964 = vst [vmem:[%s2592_s29 + $0x30] sm:$0xff] %v1892_v36   ;;  %v1187_v39 = vadd.f32 %v1186_v32, %v952_v37 }
 0x1fd   : > { %v907_v40 = vpop.f32.mrf.mxu0 }
 0x1fe   : > { %v1223_v42 = vmax.f32 %v1187_v39, 0.0  ;;  %v1150_v46 = vadd.f32 %v1149_v38, %v907_v40 }
 0x200   : > { %v1932_v43 = vpack.c.bf16 %v1223_v42, %v1222_v41  ;;  %v1208_v50 = vmax.f32 %v1150_v46, 0.0 }
 0x202   : > { %1972 = vst [vmem:[%s2592_s29 + $0x70] sm:$0xff] %v1932_v43  }
 0x203   : > { %v955_v45 = vpop.f32.mrf.mxu2 }
 0x204   : > { %v1190_v54 = vadd.f32 %v1189_v44, %v955_v45 }
 0x205   : > { %v910_v47 = vpop.f32.mrf.mxu0 }
 0x206   : > { %v1152_v49 = vadd.f32 %v1151_v48, %v910_v47  ;;  %v1224_v61 = vmax.f32 %v1190_v54, 0.0 }
 0x208   : > { %v1209_v51 = vmax.f32 %v1152_v49, 0.0 }
 0x20a   : > { %v1897_v55 = vpack.c.bf16 %v1209_v51, %v1208_v50 }
 0x20b   : > { %v958_v56 = vpop.f32.mrf.mxu2 }
 0x20c   : > { %1965 = vst [vmem:[%s2592_s29 + $0x38] sm:$0xff] %v1897_v55   ;;  %v1192_v60 = vadd.f32 %v1191_v57, %v958_v56 }
 0x20e   : > { %v1225_v62 = vmax.f32 %v1192_v60, 0.0 }
 0x210   : > { %v1937_v63 = vpack.c.bf16 %v1225_v62, %v1224_v61 }
 0x212   : > { %1973 = vst [vmem:[%s2592_s29 + $0x78] sm:$0xff] %v1937_v63  }
 0x213   : > { %2179 = shalt.err (!%p2176_p1)
}
 0x214   : > { %2001 = dma.vmem_to_hbm [thread:$0]  (%p2309_p5), %s1333_s13, 2048, %s1335_s14, %s1315_s25, %s2234_s26, %s2234_s26, %s2235_s28  }
 0x215 PF: > { %p2023_p2 = scmp.ge.s32.totalorder %s2226_s24, 2  ;;  %s1366_s9 = sand.u32 1, %s2214_s21  }
 0x216   : > { %s1367_s29 = scalar_lea.sflag [#allocation4], %s1366_s9 }
 0x217   : > { %p2013_p3 = pnand %p2023_p2, %p2313_p6 }
 0x219   : > { %p2014_p4 = pneg %p2013_p3 }
 0x21b   : > { %2205 = dma.done.wait (%p2014_p4), %s1367_s29, 2048  }
 0x21c   : > { %2207 = vsyncadd (%p2014_p4), %s1367_s29, 4294965248  ;;  %s1377_s11 = scalar_lea.sflag [#allocation9], %s1366_s9 }
 0x21d   : > { %2209 = dma.done.wait (%p2014_p4), %s1377_s11, 512  }
 0x21e   : > { %2211 = vsyncadd (%p2014_p4), %s1377_s11, 4294966784  ;;  %p22_p5 = scmp.ge.s32.totalorder %s2296_s27, 4   ;;  %s2656_s21 = smov %s2218_s22 }
 0x21f   : > { %s2657_s22 = smov %s2222_s23  ;;  %s2658_s23 = smov %s2307_s30 }
 0x220   : > { %s2659_s24 = smov %s2296_s27  ;;  %24 = sbr.rel (!%p22_p5) target bundleno = 7 (0x7), region = 104 }
 0x225   :  { %1383 = vsyncpa [#allocation3], 1 }
 0x226   :  { %1385 = vsyncpa [#allocation3 + $0x1], 1 }
 0x227   :  { %1386 = vsyncpa [#allocation6], 1 }
 0x228   :  { %1387 = vsyncpa [#allocation4], 1 }
 0x229   :  { %1389 = vsyncpa [#allocation4 + $0x1], 1 }
 0x22a   :  { %1390 = vsyncpa [#allocation9], 1 }
 0x22b   :  { %1392 = vsyncpa [#allocation9 + $0x1], 1 }

</bundles_post_ra>
